<compile_context>
chip_gen: v7x
topology: tpu7x:2x2x1
jax: 0.10.0
libtpu: 0.0.40
codegen_flags: <defaults>
</compile_context>

<pallas_src>
import functools

import jax
import jax.numpy as jnp
from jax.experimental import pallas as pl
from jax.experimental.pallas import tpu as pltpu


def _din_attention_kernel(use_softmax,
                          cand_ref, clicks_ref, mask_ref,
                          wcand_ref, wck_ref, bav_ref, b2_ref,
                          out_ref):
    tb, L, D = clicks_ref.shape
    H = bav_ref.shape[-1]

    cand = cand_ref[...]            # (tb, D)    native dtype
    clicks = clicks_ref[...]        # (tb, L, D) native dtype
    mask = mask_ref[...]            # (tb, L)    f32

    b1 = bav_ref[0:1, :]            # (1, H) f32
    alpha = bav_ref[1:2, :]         # (1, H) f32
    w2 = bav_ref[2:3, :]            # (1, H) f32

    # Candidate-only contribution, hoisted out of the L dimension:
    #   g = cand @ (W1c + W1d) + b1                         -> (tb, H) f32
    g = jnp.dot(cand, wcand_ref[...],
                preferred_element_type=jnp.float32) + b1

    # Click-dependent contribution as ONE K=2D MXU matmul:
    #   [clicks | cand*clicks] @ [[W1k - W1d]; [W1p]]       -> (tb*L, H) f32
    x2 = jnp.concatenate([clicks, clicks * cand[:, None, :]], axis=-1)
    h = jnp.dot(x2.reshape(tb * L, 2 * D), wck_ref[...],
                preferred_element_type=jnp.float32)
    h = h.reshape(tb, L, H) + g[:, None, :]                 # (tb, L, H) f32

    # Dice (eval-mode BN, running mean=0 var=1 eps=1e-9 -> identity in f32).
    # TODO(synk): training-mode BatchNorm batch statistics are not reproduced.
    p = jax.nn.sigmoid(h)                                   # EUP
    h_act = h * (p + (1.0 - p) * alpha[:, None, :])         # fused Dice gate

    # Output Linear(H -> 1) as VPU multiply + lane reduce (keeps the MXU free).
    score = jnp.sum(h_act * w2[:, None, :], axis=-1) + b2_ref[0]   # (tb, L) f32
    score = score * mask
    if use_softmax:                                         # static config branch
        score = score + (-1e9) * (1.0 - mask)
        score = score - jnp.max(score, axis=-1, keepdims=True)
        e = jnp.exp(score)
        s = jnp.sum(e, axis=-1, keepdims=True)
        inv = pl.reciprocal(s, approx=True)                 # EUP slot
        inv = inv * (2.0 - s * inv)                         # one Newton step
        score = e * inv

    out = jnp.sum(score[:, :, None] * clicks, axis=1)       # (tb, D) f32
    out_ref[...] = out.astype(out_ref.dtype)


def _pick_block_b(B, L, D, H, elt_bytes, vmem_budget_bytes):
    """VMEM-aware batch rows per grid step.

    Targets ~8192 flattened (tb*L) rows per step (mem-bound tiling sweet spot),
    stays inside a VMEM budget sized for v7x's 64 MiB, and keeps several grid
    steps when the batch is large enough so the "parallel" axis can shard
    across both v7x TensorCores."""
    per_row = (2 * L * D * elt_bytes            # clicks block, double-buffered
               + 4 * D * elt_bytes              # candidate + output blocks
               + 2 * L * 4                      # mask block (f32)
               + L * (2 * D * elt_bytes         # concat([clicks, cand*clicks])
                      + 5 * H * 4               # h / p / gate / h_act (f32)
                      + D * 4 + 16))            # score*clicks product + scores
    tb = max(1, min(B, vmem_budget_bytes // max(per_row, 1)))
    tb = min(tb, max(1, 8192 // max(L, 1)))
    if B >= 16:
        tb = min(tb, max(1, B // 8))            # keep >=8 parallel grid steps
    elif B >= 2:
        tb = min(tb, max(1, B // 2))            # keep >=2 parallel grid steps
    if tb < B:
        tb = min(B, max(8, (tb // 8) * 8))      # sublane-aligned sub-block
    return tb


def din_attention(candidate, clicks, mask, params, use_softmax=False, block_b=None):
    """candidate: (B, 1, D) or (B, D); clicks: (B, L, D); mask: (B, L).

    Returns (B, D) in the clicks dtype. Big tensors stay in their native dtype
    (bf16 in production); only the small weight blocks are cast."""
    B, L, D = clicks.shape
    H = params["b1"].shape[-1]
    in_dtype = clicks.dtype

    cand2d = candidate.reshape(B, D).astype(in_dtype)       # lane-dense candidate
    mask2d = mask.reshape(B, L).astype(jnp.float32)         # no (B, L, 1) padding

    # Weight preprocessing: hoist/regroup the four (D, H) row-blocks of W1.
    #   concat(c,k,c-k,c*k)@W1 == c@(W1c+W1d) + [k | c*k] @ [[W1k-W1d];[W1p]]
    w1 = params["W1"].astype(jnp.float32)
    w1c, w1k, w1d, w1p = jnp.split(w1, 4, axis=0)           # each (D, H)
    wcand = (w1c + w1d).astype(in_dtype)                    # (D, H)
    wck = jnp.concatenate([w1k - w1d, w1p], axis=0).astype(in_dtype)   # (2D, H)
    bav = jnp.stack([params["b1"].reshape(H),
                     params["alpha"].reshape(H),
                     params["W2"].reshape(H)], axis=0).astype(jnp.float32)  # (3, H)
    b2 = params["b2"].reshape(1).astype(jnp.float32)        # SMEM scalar

    vmem_budget = 36 << 20                                  # fits v7x's 64 MiB VMEM
    tb = int(block_b) if block_b is not None else _pick_block_b(
        B, L, D, H, jnp.dtype(in_dtype).itemsize, vmem_budget)

    # Pad the batch so the grid covers it exactly (no exact-divisor requirement).
    grid_b = pl.cdiv(B, tb)
    Bp = grid_b * tb
    if tb < Bp:
        assert tb % 8 == 0, "block_b must be a multiple of 8 when < batch"
    clicks_p, cand_p, mask_p = clicks, cand2d, mask2d
    if Bp != B:
        pad = Bp - B
        clicks_p = jnp.pad(clicks, ((0, pad), (0, 0), (0, 0)))
        cand_p = jnp.pad(cand2d, ((0, pad), (0, 0)))
        mask_p = jnp.pad(mask2d, ((0, pad), (0, 0)))

    kernel = functools.partial(_din_attention_kernel, use_softmax)
    out = pl.pallas_call(
        kernel,
        out_shape=jax.ShapeDtypeStruct((Bp, D), in_dtype),
        grid=(grid_b,),
        in_specs=[
            pl.BlockSpec((tb, D), lambda i: (i, 0)),        # candidate (lane-dense)
            pl.BlockSpec((tb, L, D), lambda i: (i, 0, 0)),  # clicks (native dtype)
            pl.BlockSpec((tb, L), lambda i: (i, 0)),        # mask
            pl.BlockSpec((D, H), lambda i: (0, 0)),         # W1c + W1d
            pl.BlockSpec((2 * D, H), lambda i: (0, 0)),     # [[W1k - W1d]; [W1p]]
            pl.BlockSpec((3, H), lambda i: (0, 0)),         # [b1; alpha; W2]
            pl.BlockSpec(memory_space=pltpu.MemorySpace.SMEM),  # b2 scalar
        ],
        out_specs=pl.BlockSpec((tb, D), lambda i: (i, 0)),  # lane-dense output
        compiler_params=pltpu.CompilerParams(
            dimension_semantics=("parallel",),
            vmem_limit_bytes=48 << 20),
    )(cand_p, clicks_p, mask_p, wcand, wck, bav, b2)
    return out[:B]


def din_attention_ref(candidate, clicks, mask, params, use_softmax=False):
    """Pure-JAX reference mirroring the PyTorch forward (eval mode)."""
    B, L, D = clicks.shape
    cand = jnp.broadcast_to(candidate.reshape(B, 1, D), (B, L, D)).astype(jnp.float32)
    clk = clicks.astype(jnp.float32)
    x = jnp.concatenate([cand, clk, cand - clk, cand * clk], axis=-1)
    x = x.reshape(B * L, 4 * D)
    h = x @ params["W1"] + params["b1"]
    p = jax.nn.sigmoid(h / jnp.sqrt(1.0 + 1e-9))   # eval-mode BN (mean=0, var=1)
    h = p * h + (1.0 - p) * params["alpha"] * h
    w = (h @ params["W2"] + params["b2"]).reshape(B, L)
    w = w * mask.astype(jnp.float32)
    if use_softmax:
        w = w + (-1e9) * (1.0 - mask.astype(jnp.float32))
        w = jax.nn.softmax(w, axis=-1)
    return jnp.sum(w[..., None] * clk, axis=1)


if __name__ == "__main__":
    B, L, D, H = 4, 8, 32, 64   # batch, click-seq len, embedding dim, attn hidden units

    key = jax.random.PRNGKey(0)
    k_cand, k_clicks, k_w1, k_w2, k_alpha = jax.random.split(key, 5)

    candidate = jax.random.normal(k_cand, (B, 1, D), dtype=jnp.float32)
    clicks = jax.random.normal(k_clicks, (B, L, D), dtype=jnp.float32)
    # deterministic mask: batch b keeps the first 4+b clicks
    mask = (jnp.arange(L)[None, :] < (4 + jnp.arange(B))[:, None]).astype(jnp.float32)

    # Parameters (shapes per DINAttention.__init__ defaults: 4*D -> 64 -> 1).
    # Dice alpha is zero at PyTorch init; a small nonzero value is used here so
    # the (1-p)*alpha*x branch is actually exercised.
    params = {
        "W1": 0.05 * jax.random.normal(k_w1, (4 * D, H), dtype=jnp.float32),
        "b1": jnp.zeros((H,), dtype=jnp.float32),
        "alpha": 0.1 * jax.random.normal(k_alpha, (H,), dtype=jnp.float32),
        "W2": 0.05 * jax.random.normal(k_w2, (H, 1), dtype=jnp.float32),
        "b2": jnp.zeros((1,), dtype=jnp.float32),
    }

    for use_softmax in (False, True):   # config default din_use_softmax=False
        out = din_attention(candidate, clicks, mask, params, use_softmax=use_softmax)
        out = jax.block_until_ready(out)
        ref = din_attention_ref(candidate, clicks, mask, params, use_softmax=use_softmax)
        assert out.shape == (B, D)
        tol = 1e-4
        assert jnp.allclose(out, ref, rtol=tol, atol=tol), (
            f"use_softmax={use_softmax} max abs err {jnp.max(jnp.abs(out - ref))}")
    print("KERNEL_OK")
</pallas_src>

<mosaic_0001>
module attributes {stable_mosaic.version = 11 : i64} {
  func.func @_din_attention_kernel(%arg0: i32, %arg1: memref<4x32xf32, #tpu.memory_space<vmem>>, %arg2: memref<4x8x32xf32, #tpu.memory_space<vmem>>, %arg3: memref<4x8xf32, #tpu.memory_space<vmem>>, %arg4: memref<32x64xf32, #tpu.memory_space<vmem>>, %arg5: memref<64x64xf32, #tpu.memory_space<vmem>>, %arg6: memref<3x64xf32, #tpu.memory_space<vmem>>, %arg7: memref<1xf32, #tpu.memory_space<smem>>, %arg8: memref<4x32xf32, #tpu.memory_space<vmem>>) attributes {dimension_semantics = [#tpu.dimension_semantics<parallel>], iteration_bounds = array<i64: 1>, scalar_prefetch = 0 : i64, scratch_operands = 0 : i64, tpu.core_type = #tpu.core_type<tc>, window_params = [{transform_indices = @transform_0, window_bounds = array<i64: 4, 32>}, {transform_indices = @transform_1, window_bounds = array<i64: 4, 8, 32>}, {transform_indices = @transform_2, window_bounds = array<i64: 4, 8>}, {pipeline_mode = #tpu.pipeline_mode<synchronous>, transform_indices = @transform_3, window_bounds = array<i64: 32, 64>}, {pipeline_mode = #tpu.pipeline_mode<synchronous>, transform_indices = @transform_4, window_bounds = array<i64: 64, 64>}, {pipeline_mode = #tpu.pipeline_mode<synchronous>, transform_indices = @transform_5, window_bounds = array<i64: 3, 64>}, {transform_indices = @transform_6, window_bounds = array<i64: 1>}, {transform_indices = @transform_7, window_bounds = array<i64: 4, 32>}]} {
    %c0 = arith.constant 0 : index
    %c0_0 = arith.constant 0 : index
    %0 = vector.load %arg1[%c0, %c0_0] : memref<4x32xf32, #tpu.memory_space<vmem>>, vector<4x32xf32>
    %c0_1 = arith.constant 0 : index
    %c0_2 = arith.constant 0 : index
    %c0_3 = arith.constant 0 : index
    %1 = vector.load %arg2[%c0_1, %c0_2, %c0_3] : memref<4x8x32xf32, #tpu.memory_space<vmem>>, vector<4x8x32xf32>
    %c0_4 = arith.constant 0 : index
    %c0_5 = arith.constant 0 : index
    %2 = vector.load %arg3[%c0_4, %c0_5] : memref<4x8xf32, #tpu.memory_space<vmem>>, vector<4x8xf32>
    %c0_6 = arith.constant 0 : index
    %c0_7 = arith.constant 0 : index
    %3 = vector.load %arg6[%c0_6, %c0_7] : memref<3x64xf32, #tpu.memory_space<vmem>>, vector<1x64xf32>
    %c1 = arith.constant 1 : index
    %c0_8 = arith.constant 0 : index
    %4 = vector.load %arg6[%c1, %c0_8] : memref<3x64xf32, #tpu.memory_space<vmem>>, vector<1x64xf32>
    %c2 = arith.constant 2 : index
    %c0_9 = arith.constant 0 : index
    %5 = vector.load %arg6[%c2, %c0_9] : memref<3x64xf32, #tpu.memory_space<vmem>>, vector<1x64xf32>
    %c0_10 = arith.constant 0 : index
    %c0_11 = arith.constant 0 : index
    %6 = vector.load %arg4[%c0_10, %c0_11] : memref<32x64xf32, #tpu.memory_space<vmem>>, vector<32x64xf32>
    %cst = arith.constant dense<0.000000e+00> : vector<4x64xf32>
    %7 = tpu.matmul %0, %6, %cst {dimension_numbers = #tpu.dot_dimension_numbers<[1], [0], [0], [1], [0, 0, 1, 1], [], []>} : vector<4x32xf32>, vector<32x64xf32>, vector<4x64xf32> -> vector<4x64xf32>
    %8 = vector.broadcast %3 : vector<1x64xf32> to vector<4x64xf32>
    %9 = arith.addf %7, %8 : vector<4x64xf32>
    %10 = vector.shape_cast %0 : vector<4x32xf32> to vector<4x1x32xf32>
    %11 = vector.broadcast %10 : vector<4x1x32xf32> to vector<4x8x32xf32>
    %12 = arith.mulf %1, %11 : vector<4x8x32xf32>
    %13 = tpu.concatenate %1, %12 in 2 : vector<4x8x32xf32>, vector<4x8x32xf32> -> vector<4x8x64xf32>
    %14 = vector.shape_cast %13 : vector<4x8x64xf32> to vector<32x64xf32>
    %c0_12 = arith.constant 0 : index
    %c0_13 = arith.constant 0 : index
    %15 = vector.load %arg5[%c0_12, %c0_13] : memref<64x64xf32, #tpu.memory_space<vmem>>, vector<64x64xf32>
    %cst_14 = arith.constant dense<0.000000e+00> : vector<32x64xf32>
    %16 = tpu.matmul %14, %15, %cst_14 {dimension_numbers = #tpu.dot_dimension_numbers<[1], [0], [0], [1], [0, 0, 1, 1], [], []>} : vector<32x64xf32>, vector<64x64xf32>, vector<32x64xf32> -> vector<32x64xf32>
    %17 = vector.shape_cast %16 : vector<32x64xf32> to vector<4x8x64xf32>
    %18 = vector.shape_cast %9 : vector<4x64xf32> to vector<4x1x64xf32>
    %19 = vector.broadcast %18 : vector<4x1x64xf32> to vector<4x8x64xf32>
    %20 = arith.addf %17, %19 : vector<4x8x64xf32>
    %21 = arith.negf %20 : vector<4x8x64xf32>
    %22 = math.exp %21 : vector<4x8x64xf32>
    %cst_15 = arith.constant 1.000000e+00 : f32
    %23 = vector.broadcast %cst_15 : f32 to vector<4x8x64xf32>
    %24 = arith.addf %23, %22 : vector<4x8x64xf32>
    %25 = arith.divf %23, %24 : vector<4x8x64xf32>
    %cst_16 = arith.constant 1.000000e+00 : f32
    %26 = vector.broadcast %cst_16 : f32 to vector<4x8x64xf32>
    %27 = arith.subf %26, %25 : vector<4x8x64xf32>
    %28 = vector.shape_cast %4 : vector<1x64xf32> to vector<1x1x64xf32>
    %29 = vector.broadcast %28 : vector<1x1x64xf32> to vector<4x8x64xf32>
    %30 = arith.mulf %27, %29 : vector<4x8x64xf32>
    %31 = arith.addf %25, %30 : vector<4x8x64xf32>
    %32 = arith.mulf %20, %31 : vector<4x8x64xf32>
    %33 = vector.shape_cast %5 : vector<1x64xf32> to vector<1x1x64xf32>
    %34 = vector.broadcast %33 : vector<1x1x64xf32> to vector<4x8x64xf32>
    %35 = arith.mulf %32, %34 : vector<4x8x64xf32>
    %cst_17 = arith.constant dense<0.000000e+00> : vector<4x8xf32>
    %36 = vector.multi_reduction <add>, %35, %cst_17 [2] : vector<4x8x64xf32> to vector<4x8xf32>
    %c0_18 = arith.constant 0 : index
    %37 = memref.load %arg7[%c0_18] : memref<1xf32, #tpu.memory_space<smem>>
    %38 = vector.broadcast %37 : f32 to vector<4x8xf32>
    %39 = arith.addf %36, %38 : vector<4x8xf32>
    %40 = arith.mulf %39, %2 : vector<4x8xf32>
    %41 = vector.shape_cast %40 : vector<4x8xf32> to vector<4x8x1xf32>
    %42 = vector.broadcast %41 : vector<4x8x1xf32> to vector<4x8x32xf32>
    %43 = arith.mulf %42, %1 : vector<4x8x32xf32>
    %cst_19 = arith.constant dense<0.000000e+00> : vector<4x32xf32>
    %44 = vector.multi_reduction <add>, %43, %cst_19 [1] : vector<4x8x32xf32> to vector<4x32xf32>
    %c0_20 = arith.constant 0 : index
    %c0_21 = arith.constant 0 : index
    %45 = vector.load %arg8[%c0_20, %c0_21] : memref<4x32xf32, #tpu.memory_space<vmem>>, vector<4x32xf32>
    tpu.vector_store %arg8[%c0_20, %c0_21], %44 {strides = array<i32>} : memref<4x32xf32, #tpu.memory_space<vmem>>, vector<4x32xf32>,
    return
  }
  func.func @transform_0(%arg0: i32) -> (i32, i32) {
    %c0_i32 = arith.constant 0 : i32
    %c0_i32_0 = arith.constant 0 : i32
    return %arg0, %c0_i32 : i32, i32
  }
  func.func @transform_1(%arg0: i32) -> (i32, i32, i32) {
    %c0_i32 = arith.constant 0 : i32
    %c0_i32_0 = arith.constant 0 : i32
    %c0_i32_1 = arith.constant 0 : i32
    return %arg0, %c0_i32, %c0_i32_0 : i32, i32, i32
  }
  func.func @transform_2(%arg0: i32) -> (i32, i32) {
    %c0_i32 = arith.constant 0 : i32
    %c0_i32_0 = arith.constant 0 : i32
    return %arg0, %c0_i32 : i32, i32
  }
  func.func @transform_3(%arg0: i32) -> (i32, i32) {
    %c0_i32 = arith.constant 0 : i32
    %c0_i32_0 = arith.constant 0 : i32
    %c0_i32_1 = arith.constant 0 : i32
    return %c0_i32, %c0_i32_0 : i32, i32
  }
  func.func @transform_4(%arg0: i32) -> (i32, i32) {
    %c0_i32 = arith.constant 0 : i32
    %c0_i32_0 = arith.constant 0 : i32
    %c0_i32_1 = arith.constant 0 : i32
    return %c0_i32, %c0_i32_0 : i32, i32
  }
  func.func @transform_5(%arg0: i32) -> (i32, i32) {
    %c0_i32 = arith.constant 0 : i32
    %c0_i32_0 = arith.constant 0 : i32
    %c0_i32_1 = arith.constant 0 : i32
    return %c0_i32, %c0_i32_0 : i32, i32
  }
  func.func @transform_6(%arg0: i32) -> i32 {
    %c0_i32 = arith.constant 0 : i32
    %c0_i32_0 = arith.constant 0 : i32
    return %c0_i32 : i32
  }
  func.func @transform_7(%arg0: i32) -> (i32, i32) {
    %c0_i32 = arith.constant 0 : i32
    %c0_i32_0 = arith.constant 0 : i32
    return %arg0, %c0_i32 : i32, i32
  }
}

</mosaic_0001>

<bundles_post_ra>
// kernel: tpu_custom_call.1
= control target key start
LH: loop header
LB: loop body
LE: loop exit
PB: predicated region body
PF: predicated region fallthrough
CT: control target
= control target key end

     0   :  { %13 = vsyncpa [#allocation4], 0  ;;  %s1023_s0 = inlined_call_operand.hbm [shape: f32[4,32], index: 0, kind: input, shape index: {}]   ;;  %s1024_s1 = inlined_call_operand.hbm [shape: f32[4,8,32], index: 1, kind: input, shape index: {}]   ;;  %s1025_s2 = inlined_call_operand.vmem [shape: f32[4,8], index: 2, kind: input, shape index: {}]   ;;  %s1026_s3 = inlined_call_operand.hbm [shape: f32[32,64], index: 3, kind: input, shape index: {}]   ;;  %s1027_s4 = inlined_call_operand.hbm [shape: f32[64,64], index: 4, kind: input, shape index: {}]   ;;  %s1028_s5 = inlined_call_operand.vmem [shape: f32[3,64], index: 5, kind: input, shape index: {}]   ;;  %s1029_s6 = inlined_call_operand.<no memory space> [shape: f32[1], index: 6, kind: input, shape index: {}]   ;;  %s1030_s7 = inlined_call_operand.hbm [shape: f32[4,32], index: 7, kind: output, shape index: {}]  }
   0x1   :  { %14 = vsyncpa [#allocation7], 0 }
   0x2   :  { %15 = vsyncpa [#allocation10], 0 }
   0x3   :  { %16 = vsyncpa [#allocation5], 0  ;;  %s817_s24 = smov [#allocation6]   ;;  %s699_s28 = scalar_lea.hbm %s1024_s1, 512 }
   0x4   :  { %s32_s25 = sshll.u32 %s817_s24, 4  ;;  %p700_p0 = scmp.ne.s32.totalorder %s1024_s1, %s699_s28  ;;  %s33_s25 = int_to_ptr.vmem [resolvable:$true] %s32_s25 }
   0x5   :  { %p703_p1 = scmp.lt.u32.totalorder %s699_s28, %s1024_s1 }
   0x7   :  { %p705_p2 = pnand %p703_p1, %p700_p0 }
   0x9   :  { %708 = shalt.err (!%p705_p2)
}
   0xa   :  { %s709_s10 = scalar_lea.vmem %s33_s25, 512  ;;  %p714_p4 = scmp.lt.s32.totalorder %s33_s25, %s33_s25 }
   0xb   :  { %p710_p3 = scmp.ne.s32.totalorder %s33_s25, %s709_s10  ;;  %p715_p5 = scmp.lt.s32.totalorder %s709_s10, %s709_s10 }
   0xd   :  { %p716_p6 = por %p715_p5, %p714_p4 }
   0xf   :  { %p717_p7 = pnand %p716_p6, %p710_p3 }
  0x11   :  { %720 = shalt.err (!%p717_p7)
}
  0x12   :  { %s818_s11 = smov 128   ;;  %s819_s12 = smov 8  }
  0x13   :  { %38 = dma.hbm_to_vmem [thread:$0]  %s1024_s1, 512, %s33_s25, [#allocation7], %s818_s11, %s818_s11, %s819_s12  }
  0x14   :  { %s820_s15 = smov [#allocation3]   ;;  %s821_s17 = smov [#allocation8]  }
  0x15   :  { %s23_s16 = sshll.u32 %s820_s15, 4  ;;  %s46_s18 = sshll.u32 %s821_s17, 4  ;;  %s24_s16 = int_to_ptr.vmem [resolvable:$true] %s23_s16  ;;  %s47_s18 = int_to_ptr.vmem [resolvable:$true] %s46_s18 }
  0x16   :  { %s721_s21 = scalar_lea.hbm %s1023_s0, 64 }
  0x17   :  { %p722_p8 = scmp.ne.s32.totalorder %s1023_s0, %s721_s21  ;;  %p725_p9 = scmp.lt.u32.totalorder %s721_s21, %s1023_s0 }
  0x19   :  { %p727_p10 = pnand %p725_p9, %p722_p8 }
  0x1b   :  { %730 = shalt.err (!%p727_p10)
}
  0x1c   :  { %s731_s1 = scalar_lea.vmem %s24_s16, 64  ;;  %p736_p12 = scmp.lt.s32.totalorder %s24_s16, %s24_s16 }
  0x1d   :  { %p732_p11 = scmp.ne.s32.totalorder %s24_s16, %s731_s1  ;;  %p737_p13 = scmp.lt.s32.totalorder %s731_s1, %s731_s1 }
  0x1f   :  { %p738_p0 = por %p737_p13, %p736_p12 }
  0x21   :  { %p739_p1 = pnand %p738_p0, %p732_p11 }
  0x23   :  { %742 = shalt.err (!%p739_p1)
}
  0x24   :  { %26 = dma.hbm_to_vmem [thread:$0]  %s1023_s0, 64, %s24_s16, [#allocation4]  }
  0x25   :  { %s743_s30 = scalar_lea.hbm %s1026_s3, 512 }
  0x26   :  { %p744_p2 = scmp.ne.s32.totalorder %s1026_s3, %s743_s30  ;;  %p747_p3 = scmp.lt.u32.totalorder %s743_s30, %s1026_s3 }
  0x28   :  { %p749_p4 = pnand %p747_p3, %p744_p2 }
  0x2a   :  { %752 = shalt.err (!%p749_p4)
}
  0x2b   :  { %s753_s14 = scalar_lea.vmem %s47_s18, 512  ;;  %p758_p6 = scmp.lt.s32.totalorder %s47_s18, %s47_s18 }
  0x2c   :  { %p754_p5 = scmp.ne.s32.totalorder %s47_s18, %s753_s14  ;;  %p759_p7 = scmp.lt.s32.totalorder %s753_s14, %s753_s14 }
  0x2e   :  { %p760_p8 = por %p759_p7, %p758_p6 }
  0x30   :  { %p761_p9 = pnand %p760_p8, %p754_p5 }
  0x32   :  { %764 = shalt.err (!%p761_p9)
}
  0x33   :  { %52 = dma.hbm_to_vmem [thread:$0]  %s1026_s3, 512, %s47_s18, [#allocation7], %s818_s11, %s818_s11, %s819_s12  }
  0x34   :  { %s822_s16 = smov [#allocation9]   ;;  %s765_s21 = scalar_lea.hbm %s1027_s4, 1024 }
  0x35   :  { %s58_s17 = sshll.u32 %s822_s16, 4  ;;  %p766_p10 = scmp.ne.s32.totalorder %s1027_s4, %s765_s21  ;;  %s59_s17 = int_to_ptr.vmem [resolvable:$true] %s58_s17 }
  0x36   :  { %p769_p11 = scmp.lt.u32.totalorder %s765_s21, %s1027_s4 }
  0x38   :  { %p771_p12 = pnand %p769_p11, %p766_p10 }
  0x3a   :  { %774 = shalt.err (!%p771_p12)
}
  0x3b   :  { %s775_s1 = scalar_lea.vmem %s59_s17, 1024  ;;  %p780_p0 = scmp.lt.s32.totalorder %s59_s17, %s59_s17 }
  0x3c   :  { %p776_p13 = scmp.ne.s32.totalorder %s59_s17, %s775_s1  ;;  %p781_p1 = scmp.lt.s32.totalorder %s775_s1, %s775_s1 }
  0x3e   :  { %p782_p2 = por %p781_p1, %p780_p0 }
  0x40   :  { %p783_p3 = pnand %p782_p2, %p776_p13 }
  0x42   :  { %786 = shalt.err (!%p783_p3)
}
  0x43   :  { %64 = dma.hbm_to_vmem [thread:$0]  %s1027_s4, 1024, %s59_s17, [#allocation10], %s818_s11, %s818_s11, %s819_s12  }
  0x44   :  { %809 = dma.done.wait [#allocation4], 64  }
  0x45   :  { %810 = vsyncadd [#allocation4], 4294967232 }
  0x46   :  { %811 = dma.done.wait [#allocation7], 1024  }
  0x47   :  { %812 = vsyncadd [#allocation7], 4294966272 }
  0x48   :  { %813 = dma.done.wait [#allocation10], 1024  }
  0x49   :  { %814 = vsyncadd [#allocation10], 4294966272  ;;  %v175_v0 = vlaneseq  ;;  %v823_v1 = vmov 1966171168   ;;  %v824_v3 = vmov 0.0|0.0   ;;  %vm825_vm0 = vmmov 0  }
  0x4a   :  { %v173_v2 = vunpack.c.l.s4 %v823_v1  ;;  %646 = vmatprep.subr.bf16.mxu0 %v824_v3  ;;  %v826_v5 = vmov 0.0   ;;  %v81_v8 = vld [vmem:[#allocation3] sm:$0xf]  ;;  %v90_v11 = vld [vmem:[#allocation8] sm:$0xff]  ;;  %v91_v13 = vld [vmem:[#allocation8 + $0x8] sm:$0xff]  ;;  %s827_s4 = smov 32  }
  0x4b   :  { %v927_v4 = vshrl.u32 %v175_v0, 7  ;;  %621 = vmatprep.mubr.msk.f32.mxu0 %vm825_vm0, %v826_v5  ;;  %v936_v12 = vld [vmem:[#allocation6] sm:$0xff]  ;;  %v241_v15 = vld [vmem:[#allocation9 + $0x8] sm:$0xff]  ;;  %v647_v18 = vpack.c.bf16 %v91_v13, %v90_v11  ;;  %v92_v20 = vld [vmem:[#allocation8 + $0x10] sm:$0xff]  ;;  %vm98_vm1 = vcmask 261120   ;;  %vm248_vm2 = vcmask 523264  }
  0x4c   :  { %v174_v6 = vunpack.c.0.s8 %v173_v2  ;;  %v240_v14 = vld [vmem:[#allocation9] sm:$0xff]  ;;  %v93_v21 = vld [vmem:[#allocation8 + $0x18] sm:$0xff]  ;;  %v242_v22 = vld [vmem:[#allocation9 + $0x10] sm:$0xff]  ;;  %vm558_vm3 = vcmask 1041409   ;;  %vm560_vm4 = vcmask 1042434   ;;  %vm562_vm5 = vcmask 1043459  }
  0x4d   :  { %v934_v10 = vsub.s32 0, %v927_v4  ;;  %v652_v19 = vpack.c.bf16 %v241_v15, %v240_v14  ;;  %v650_v23 = vpack.c.bf16 %v93_v21, %v92_v20  ;;  %v243_v24 = vld [vmem:[#allocation9 + $0x18] sm:$0xff]  ;;  %v244_v25 = vld [vmem:[#allocation9 + $0x20] sm:$0xff]  ;;  %v245_v26 = vld [vmem:[#allocation9 + $0x28] sm:$0xff]  ;;  %648 = vmatpush3.bf16.msra.mxu0 %v647_v18  ;;  %vm565_vm6 = vcmask 257024  }
  0x4e   :  { %v930_v7 = vsub.s32 %v174_v6, %v927_v4  ;;  %v941_v30 = vld [vmem:[#allocation6 + $0x10] sm:$0xff]  ;;  %v943_v31 = vld [vmem:[#allocation6 + $0x8] sm:$0xff]  ;;  %649 = vmatprep.subr.bf16.mxu0 %v824_v3  ;;  %v656_v32 = vpack.c.bf16 %v243_v24, %v242_v22  ;;  %v660_v33 = vpack.c.bf16 %v245_v26, %v244_v25  ;;  %v948_v38 = vld [vmem:[#allocation6 + $0x18] sm:$0xff] }
  0x4f   :  { %653 = vmatprep.subr.bf16.mxu1 %v652_v19  ;;  %v246_v39 = vld [vmem:[#allocation9 + $0x30] sm:$0xff]  ;;  %v247_v40 = vld [vmem:[#allocation9 + $0x38] sm:$0xff] }
  0x50   :  { %v178_v9 = vrot.slane %v81_v8, %v930_v7  ;;  %655 = vmatpush3.bf16.msra.mxu1 %v652_v19  ;;  %v664_v45 = vpack.c.bf16 %v247_v40, %v246_v39  ;;  %v970_v54 = vld [vmem:[%s1025_s2] sm:$0xf] }
  0x51   :  { %657 = vmatprep.subr.bf16.mxu1 %v656_v32  ;;  %651 = vmatpush3.bf16.msra.mxu0 %v650_v23  ;;  %v469_v55 = vrot.slane %v970_v54, %v934_v10  ;;  %v584_v58 = vld [vmem:[%s1028_s5] ss:$0 sm:$0xff] }
  0x52   :  { %v186_v16 = vrot.slane %v178_v9, %v930_v7  ;;  %v179_v17 = vcombine.high %v178_v9, %v178_v9 }
  0x54   :  { %v199_v27 = vrot.slane %v186_v16, %v934_v10  ;;  %v194_v28 = vcombine.high %v186_v16, %v186_v16  ;;  %v193_v29 = vrot.slane %v179_v17, %v930_v7  ;;  %659 = vmatpush3.bf16.msra.mxu1 %v656_v32  ;;  %622 = vmatmul.mubr.msk.f32.vlgmr.msra.gmra.mrb[0].mxu0 %vm98_vm1, %v81_v8 }
  0x55   :  { %661 = vmatprep.subr.bf16.mxu1 %v660_v33 }
  0x56   :  { %v216_v34 = vmul.f32 %v199_v27, %v936_v12  ;;  %v207_v35 = vrot.slane %v194_v28, %v934_v10  ;;  %v203_v36 = vrot.slane %v193_v29, %v934_v10  ;;  %v195_v37 = vcombine.high %v193_v29, %v193_v29  ;;  %v594_v29 = vld [vmem:[%s1028_s5 + $0x1] ss:$0 sm:$0xff] }
  0x58   :  { %224 = vrot.lane.b32.xlu0 %v216_v34, %s827_s4  ;;  %v218_v41 = vmul.f32 %v207_v35, %v941_v30  ;;  %v217_v42 = vmul.f32 %v203_v36, %v943_v31  ;;  %v211_v43 = vrot.slane %v195_v37, %v934_v10  ;;  %663 = vmatpush3.bf16.msra.mxu1 %v660_v33 }
  0x59   :  { %665 = vmatprep.subr.bf16.mxu1 %v664_v45 }
  0x5a   :  { %228 = vrot.lane.b32.xlu1 %v218_v41, %s827_s4  ;;  %v219_v44 = vmul.f32 %v211_v43, %v948_v38 }
  0x5c   :  { %226 = vrot.lane.b32.xlu0 %v217_v42, %s827_s4  ;;  %667 = vmatpush3.bf16.msra.mxu1 %v664_v45 }
  0x5e   :  { %230 = vrot.lane.b32.xlu1 %v219_v44, %s827_s4  ;;  %v595_v44 = vld [vmem:[%s1028_s5 + $0x2] ss:$0 sm:$0xff] }
  0x62   :  { %471 = vbcast.lane.b32.xlu1 %v469_v55, 256 }
  0xca   :  { %v225_v46 = vpop.permute.xlu0 %224 }
  0xcb   :  { %v236_v47 = vsel %vm98_vm1, %v936_v12, %v225_v46 }
  0xcc   :  { %640 = vmatprep.mubr.msk.f32.mxu1 %vm248_vm2, %v236_v47  ;;  %v229_v48 = vpop.permute.xlu1 %228 }
  0xcd   :  { %v238_v49 = vsel %vm98_vm1, %v941_v30, %v229_v48 }
  0xce   :  { %v227_v50 = vpop.permute.xlu0 %226 }
  0xcf   :  { %v237_v51 = vsel %vm98_vm1, %v943_v31, %v227_v50 }
  0xd0   :  { %641 = vmatmul.mubr.msk.f32.vlgmr.msra.gmra.mrb[0].mxu1 %vm248_vm2, %v237_v51  ;;  %v231_v52 = vpop.permute.xlu1 %230 }
  0xd1   :  { %643 = vmatprep.mubr.msk.f32.mxu1 %vm248_vm2, %v238_v49  ;;  %v239_v53 = vsel %vm98_vm1, %v948_v38, %v231_v52 }
  0xd4   :  { %644 = vmatmul.mubr.msk.f32.gmra.mrb[2].mxu1 %vm248_vm2, %v239_v53 }
 0x127   :  { %v168_v56 = vpop.f32.mrb[0].mxu0 }
 0x128   :  { %v623_v57 = vpop.f32.mrb[1].mxu0  ;;  %v169_v59 = vadd.f32 %v584_v58, %v168_v56 }
 0x12a   :  { %v353_v60 = vrot.slane %v169_v59, %v930_v7 }
 0x12c   :  { %v354_v61 = vcombine.high %v353_v60, %v353_v60  ;;  %v361_v63 = vrot.slane %v353_v60, %v930_v7 }
 0x12e   :  { %v368_v62 = vrot.slane %v354_v61, %v930_v7  ;;  %v374_v2 = vrot.slane %v361_v63, %v934_v10  ;;  %v369_v5 = vcombine.high %v361_v63, %v361_v63 }
 0x130   :  { %v378_v0 = vrot.slane %v368_v62, %v934_v10  ;;  %v370_v1 = vcombine.high %v368_v62, %v368_v62  ;;  %v382_v16 = vrot.slane %v369_v5, %v934_v10  ;;  %v482_v62 = vsub.s32 2, %v927_v4 }
 0x132   :  { %v386_v9 = vrot.slane %v370_v1, %v934_v10  ;;  %v483_v63 = vrot.slane %v970_v54, %v482_v62 }
 0x1a3   :  { %v642_v3 = vpop.f32.mrb[0].mxu1 }
 0x1a4   :  { %v392_v6 = vadd.f32 %v642_v3, %v378_v0  ;;  %v327_v8 = vpop.f32.mrb[1].mxu1  ;;  %v489_v0 = vsub.s32 3, %v927_v4  ;;  %v475_v3 = vsub.s32 1, %v927_v4 }
 0x1a5   :  { %v391_v11 = vadd.f32 %v374_v2, %v327_v8  ;;  %v828_v2 = vmov 0   ;;  %v460_v8 = vstv %s1029_s6  ;;  %s829_s6 = smov [#allocation11]  }
 0x1a6   :  { %v591_v13 = vmul.f32 -1.442695, %v392_v6  ;;  %v490_v1 = vrot.slane %v970_v54, %v489_v0  ;;  %682 = vset.pattern.permute.xlu0 %v828_v2  ;;  %681 = vset.pattern.permute.xlu1 %v828_v2  ;;  %v476_v5 = vrot.slane %v970_v54, %v475_v3  ;;  %s573_s9 = sshll.u32 %s829_s6, 4  ;;  %s574_s9 = int_to_ptr.vmem [resolvable:$true] %s573_s9 }
 0x1a7   :  { %v590_v14 = vmul.f32 -1.442695, %v391_v11  ;;  %v645_v15 = vpop.f32.mrb[2].mxu1  ;;  %s787_s10 = scalar_lea.vmem %s574_s9, 64  ;;  %p792_p5 = scmp.lt.s32.totalorder %s574_s9, %s574_s9 }
 0x1a8   :  { %683 = vpow2.f32 %v591_v13  ;;  %v394_v17 = vadd.f32 %v645_v15, %v386_v9  ;;  %v337_v7 = vpop.f32.mrb[3].mxu1  ;;  %p788_p4 = scmp.ne.s32.totalorder %s574_s9, %s787_s10  ;;  %p793_p6 = scmp.lt.s32.totalorder %s787_s10, %s787_s10 }
 0x1a9   :  { %685 = vpow2.f32 %v590_v14  ;;  %v393_v18 = vadd.f32 %v382_v16, %v337_v7 }
 0x1aa   :  { %v593_v19 = vmul.f32 -1.442695, %v394_v17  ;;  %p794_p7 = por %p793_p6, %p792_p5 }
 0x1ab   :  { %v592_v20 = vmul.f32 -1.442695, %v393_v18 }
 0x1ac   :  { %687 = vpow2.f32 %v593_v19  ;;  %p795_p8 = pnand %p794_p7, %p788_p4 }
 0x1ad   :  { %689 = vpow2.f32 %v592_v20 }
 0x1b2   :  { %v684_v21 = vpop.eup %683 }
 0x1b3   :  { %v686_v22 = vpop.eup %685  ;;  %v408_v23 = vadd.f32 1.0, %v684_v21 }
 0x1b4   :  { %v407_v24 = vadd.f32 1.0, %v686_v22 }
 0x1b5   :  { %691 = vrcp.f32 %v408_v23 }
 0x1b6   :  { %v688_v25 = vpop.eup %687  ;;  %693 = vrcp.f32 %v407_v24 }
 0x1b7   :  { %v690_v26 = vpop.eup %689  ;;  %v410_v27 = vadd.f32 1.0, %v688_v25 }
 0x1b8   :  { %v409_v28 = vadd.f32 1.0, %v690_v26 }
 0x1b9   :  { %695 = vrcp.f32 %v410_v27 }
 0x1ba   :  { %697 = vrcp.f32 %v409_v28 }
 0x1bf   :  { %v692_v10 = vpop.eup %691 }
 0x1c0   :  { %v694_v32 = vpop.eup %693  ;;  %v420_v33 = vsub.f32 1.0, %v692_v10 }
 0x1c1   :  { %v419_v34 = vsub.f32 1.0, %v694_v32 }
 0x1c2   :  { %v428_v35 = vmul.f32 %v594_v29, %v420_v33 }
 0x1c3   :  { %v696_v36 = vpop.eup %695  ;;  %v427_v37 = vmul.f32 %v594_v29, %v419_v34 }
 0x1c4   :  { %v698_v39 = vpop.eup %697  ;;  %v432_v40 = vadd.f32 %v692_v10, %v428_v35  ;;  %v422_v41 = vsub.f32 1.0, %v696_v36 }
 0x1c5   :  { %v431_v42 = vadd.f32 %v694_v32, %v427_v37  ;;  %v421_v43 = vsub.f32 1.0, %v698_v39 }
 0x1c6   :  { %v436_v45 = vmul.f32 %v432_v40, %v392_v6  ;;  %v430_v46 = vmul.f32 %v594_v29, %v422_v41  ;;  %v472_v6 = vpop.permute.xlu1 %471 }
 0x1c7   :  { %v435_v47 = vmul.f32 %v431_v42, %v391_v11  ;;  %v429_v48 = vmul.f32 %v594_v29, %v421_v43 }
 0x1c8   :  { %v434_v49 = vadd.f32 %v696_v36, %v430_v46  ;;  %v444_v50 = vmul.f32 %v595_v44, %v436_v45 }
 0x1c9   :  { %v433_v51 = vadd.f32 %v698_v39, %v429_v48  ;;  %v443_v52 = vmul.f32 %v595_v44, %v435_v47 }
 0x1ca   :  { %v438_v53 = vmul.f32 %v434_v49, %v394_v17  ;;  %v450_v55 = vsel %vm248_vm2, %v444_v50, 0.0 }
 0x1cb   :  { %v437_v56 = vmul.f32 %v433_v51, %v393_v18  ;;  %451 = vadd.xlane.f32.xlu1 %v450_v55  ;;  %v447_v57 = vsel %vm248_vm2, %v443_v52, 0.0 }
 0x1cc   :  { %448 = vadd.xlane.f32.xlu0 %v447_v57  ;;  %v446_v58 = vmul.f32 %v595_v44, %v438_v53 }
 0x1cd   :  { %v445_v60 = vmul.f32 %v595_v44, %v437_v56 }
 0x1ce   :  { %v456_v59 = vsel %vm248_vm2, %v446_v58, 0.0 }
 0x1cf   :  { %v453_v61 = vsel %vm248_vm2, %v445_v60, 0.0 }
 0x1d0   :  { %457 = vadd.xlane.f32.xlu0 %v456_v59 }
 0x1d4   :  { %454 = vadd.xlane.f32.xlu0 %v453_v61 }
 0x1dc   :  { %485 = vbcast.lane.b32.xlu1 %v483_v63, 256 }
 0x1e0   :  { %492 = vbcast.lane.b32.xlu1 %v490_v1, 256 }
 0x1ea   :  { %478 = vbcast.lane.b32.xlu0 %v476_v5, 256 }
 0x258   :  { %v452_v9 = vpop.xlane.xlu1 %451 }
 0x259   :  { %v449_v11 = vpop.xlane.xlu0 %448  ;;  %v462_v4 = vadd.f32 %v460_v8, %v452_v9 }
 0x25a   :  { %v461_v13 = vadd.f32 %v460_v8, %v449_v11 }
 0x25c   :  { %v498_v14 = vmul.f32 %v472_v6, %v461_v13  ;;  %v486_v15 = vpop.permute.xlu1 %485 }
 0x25d   :  { %v458_v16 = vpop.xlane.xlu0 %457 }
 0x25e   :  { %v464_v17 = vadd.f32 %v460_v8, %v458_v16  ;;  %504 = vperm.xlu0 %682, %v498_v14  }
 0x260   :  { %v493_v7 = vpop.permute.xlu1 %492 }
 0x261   :  { %v501_v18 = vmul.f32 %v493_v7, %v464_v17  ;;  %v455_v19 = vpop.xlane.xlu0 %454 }
 0x262   :  { %v463_v20 = vadd.f32 %v460_v8, %v455_v19 }
 0x263   :  { %519 = vperm.xlu0 %682, %v501_v18  }
 0x264   :  { %v500_v22 = vmul.f32 %v486_v15, %v463_v20 }
 0x265   :  { %v479_v54 = vpop.permute.xlu0 %478 }
 0x266   :  { %v499_v21 = vmul.f32 %v479_v54, %v462_v4 }
 0x268   :  { %509 = vperm.xlu1 %681, %v499_v21  }
 0x26c   :  { %514 = vperm.xlu1 %681, %v500_v22  }
 0x2dd   :  { %v505_v23 = vpop.permute.xlu0 %504 }
 0x2de   :  { %v522_v24 = vmul.f32 %v505_v23, %v936_v12 }
 0x2e0   :  { %v526_v25 = vsel %vm98_vm1, %v522_v24, 0.0 }
 0x2e1   :  { %v527_v28 = vrot.slane %v526_v25, 4 }
 0x2e2   :  { %v520_v26 = vpop.permute.xlu0 %519 }
 0x2e3   :  { %v525_v27 = vmul.f32 %v520_v26, %v948_v38  ;;  %v528_v33 = vadd.f32 %v527_v28, %v526_v25 }
 0x2e5   :  { %v547_v10 = vsel %vm98_vm1, %v525_v27, 0.0  ;;  %v529_v40 = vrot.slane %v528_v33, 2 }
 0x2e6   :  { %v548_v29 = vrot.slane %v547_v10, 4 }
 0x2e7   :  { %v510_v32 = vpop.permute.xlu1 %509  ;;  %v530_v45 = vadd.f32 %v529_v40, %v528_v33 }
 0x2e8   :  { %v523_v34 = vmul.f32 %v510_v32, %v943_v31  ;;  %v549_v35 = vadd.f32 %v548_v29, %v547_v10 }
 0x2e9   :  { %v531_v50 = vrot.slane %v530_v45, 1 }
 0x2ea   :  { %v533_v36 = vsel %vm98_vm1, %v523_v34, 0.0  ;;  %v550_v42 = vrot.slane %v549_v35, 2 }
 0x2eb   :  { %v534_v37 = vrot.slane %v533_v36, 4  ;;  %v515_v39 = vpop.permute.xlu1 %514  ;;  %v532_v56 = vadd.f32 %v531_v50, %v530_v45 }
 0x2ec   :  { %v524_v12 = vmul.f32 %v515_v39, %v941_v30  ;;  %v551_v48 = vadd.f32 %v550_v42, %v549_v35 }
 0x2ed   :  { %v535_v41 = vadd.f32 %v534_v37, %v533_v36 }
 0x2ee   :  { %v540_v38 = vsel %vm98_vm1, %v524_v12, 0.0  ;;  %v552_v52 = vrot.slane %v551_v48, 1 }
 0x2ef   :  { %v536_v43 = vrot.slane %v535_v41, 2  ;;  %v541_v44 = vrot.slane %v540_v38, 4 }
 0x2f0   :  { %v553_v57 = vadd.f32 %v552_v52, %v551_v48 }
 0x2f1   :  { %v537_v46 = vadd.f32 %v536_v43, %v535_v41  ;;  %v542_v47 = vadd.f32 %v541_v44, %v540_v38 }
 0x2f3   :  { %v538_v49 = vrot.slane %v537_v46, 1  ;;  %v543_v31 = vrot.slane %v542_v47, 2 }
 0x2f5   :  { %v544_v51 = vadd.f32 %v543_v31, %v542_v47  ;;  %v539_v53 = vadd.f32 %v538_v49, %v537_v46 }
 0x2f7   :  { %v545_v55 = vrot.slane %v544_v51, 1  ;;  %v559_v58 = vsel %vm558_vm3, %v539_v53, %v532_v56 }
 0x2f9   :  { %v546_v30 = vadd.f32 %v545_v55, %v544_v51 }
 0x2fb   :  { %v561_v59 = vsel %vm560_vm4, %v546_v30, %v559_v58 }
 0x2fc   :  { %v563_v60 = vsel %vm562_vm5, %v553_v57, %v561_v59 }
 0x2fd   :  { %566 = vst.msk [vmem:[#allocation11] sm:$0xf] %vm565_vm6, %v563_v60 }
 0x2fe   :  { %798 = shalt.err (!%p795_p8)
}
 0x2ff   :  { %s799_s0 = scalar_lea.hbm %s1030_s7, 64 }
 0x300   :  { %p800_p9 = scmp.ne.s32.totalorder %s1030_s7, %s799_s0  ;;  %p803_p10 = scmp.lt.u32.totalorder %s799_s0, %s1030_s7 }
 0x302   :  { %p805_p11 = pnand %p803_p10, %p800_p9 }
 0x304   :  { %808 = shalt.err (!%p805_p11)
}
 0x305   :  { %576 = dma.vmem_to_hbm [thread:$0]  %s574_s9, 64, %s1030_s7, [#allocation5]  }
 0x306   :  { %815 = dma.done.wait [#allocation5], 64  }
 0x307   :  { %816 = vsyncadd [#allocation5], 4294967232 }
 0x308   :  { %580 = vsyncpa [#allocation4], 1 }
 0x309   :  { %581 = vsyncpa [#allocation7], 1 }
 0x30a   :  { %582 = vsyncpa [#allocation10], 1 }
 0x30b   :  { %583 = vsyncpa [#allocation5], 1 }

</bundles_post_ra>
